<compile_context>
chip_gen: v7x
topology: tpu7x:2x2x1
jax: 0.10.0
libtpu: 0.0.40
codegen_flags: <defaults>
</compile_context>

<pallas_src>
import functools

import jax
import jax.numpy as jnp
from jax.experimental import pallas as pl
from jax.experimental.pallas import tpu as pltpu

_LANE = 128


def _round_up(v, m):
    return ((v + m - 1) // m) * m


def _select_channels(arr, idx):
    """Static channel selection (slice if contiguous, else concat of slices)."""
    idx = tuple(int(i) for i in idx)
    lo = idx[0]
    if idx == tuple(range(lo, lo + len(idx))):
        return arr[..., lo:lo + len(idx)]
    return jnp.concatenate([arr[..., i:i + 1] for i in idx], axis=-1)


def _bce_elementwise(x, t, logs2, *, focal_alpha, focal_gamma,
                     soft_clamp_value, background_clamp):
    """Dense per-element openpifpaf Bce loss + validity mask (t >= 0).

    Masked-out (t < 0) positions return loss 0.  Shared between the Pallas
    kernel body and the pure-JAX reference.
    """
    t_sign = jnp.where(t > 0.0, 1.0, -1.0)
    u = t_sign * x                               # p_bar = sigmoid(-u)
    e = jnp.exp(-jnp.abs(u))                     # EUP
    log1pe = jnp.log(1.0 + e)                    # EUP
    neg_ln_p = jnp.maximum(-u, 0.0) + log1pe     # softplus(-u) = -ln p, stable
    # sigmoid(-u) = exp(-softplus(u)); reuses log1pe, avoids a VPU divide.
    p_bar = jnp.exp(-(jnp.maximum(u, 0.0) + log1pe))   # EUP
    p = 1.0 - p_bar

    flm = focal_alpha if focal_alpha else 1.0
    if focal_gamma == 1.0:
        flm = flm * (p_bar + p * neg_ln_p)
    elif focal_gamma > 0.0:
        pb = jnp.maximum(p_bar, 1e-12)           # avoid inf in pow underflow
        pb_gm1 = pb ** (focal_gamma - 1.0)       # single pow, reused below
        flm = flm * (pb_gm1 * pb + focal_gamma * pb_gm1 * p * neg_ln_p)
    elif focal_gamma == 0.0:
        pass
    else:
        raise NotImplementedError("focal_gamma < 0 not supported")

    target = x + t_sign * p_bar * flm
    d = x - target
    ad = jnp.abs(d)
    l = jnp.where(ad < 1.0, 0.5 * d * d, ad - 0.5)   # smooth_l1, beta=1

    if background_clamp:
        l = jnp.where((x < background_clamp) & (t_sign == -1.0), 0.0, l)
    if soft_clamp_value:
        l = jnp.where(
            l > soft_clamp_value,
            soft_clamp_value
            + jnp.log(jnp.maximum(1.0 - soft_clamp_value + l, 1e-12)),
            l)

    ls2 = 3.0 * jnp.tanh(logs2 * (1.0 / 3.0))
    l_fg = 0.5 * l * jnp.exp(-ls2) + 0.5 * ls2
    l = jnp.where(t > 0.0, l_fg, l)

    mask = t >= 0.0
    l = jnp.where(mask, l, 0.0)
    return l, mask


def _bce_kernel(x_ref, t_ref, s_ref, sum_ref, cnt_ref, *, focal_alpha,
                focal_gamma, soft_clamp_value, background_clamp):
    # Upcast in-register (streams may be bf16 in HBM/VMEM).
    x = x_ref[...].astype(jnp.float32)
    t = t_ref[...].astype(jnp.float32)
    s = s_ref[...].astype(jnp.float32)

    # TODO(synk): for len(xi) > 1, tanh(s/3)/exp(-ls2) could be cached in a
    # VMEM scratch across the inner channel axis; skipped since K==1 is the
    # common case and the scratch would cost 8 MiB of VMEM.
    l, mask = _bce_elementwise(
        x, t, s,
        focal_alpha=focal_alpha, focal_gamma=focal_gamma,
        soft_clamp_value=soft_clamp_value, background_clamp=background_clamp)

    blk_r, lane = l.shape
    # Layout-preserving reshape (sublane-major split by 8): partial reduce on
    # the VPU into a lane-dense (8, 128) per-step output slot.
    sum_ref[...] = jnp.sum(l.reshape(blk_r // 8, 8, lane), axis=0)
    cnt_ref[...] = jnp.sum(
        mask.astype(jnp.int32).reshape(blk_r // 8, 8, lane), axis=0)


@functools.partial(
    jax.jit,
    static_argnames=("xi", "ti", "focal_alpha", "focal_gamma",
                     "soft_clamp_value", "background_clamp", "block_rows",
                     "stream_dtype", "interpret"))
def _bce_loss_jit(x_all, t_all, *, xi, ti, focal_alpha, focal_gamma,
                  soft_clamp_value, background_clamp, block_rows,
                  stream_dtype, interpret):
    assert x_all.shape[:-1] == t_all.shape[:-1]
    K = len(xi)
    assert len(ti) == K

    x_sel = _select_channels(x_all, xi)            # [..., K]  static slice
    t_sel = _select_channels(t_all, ti)            # [..., K]
    s_sel = x_all[..., 0:1]                        # [..., 1]  log-sigma chan

    M = x_sel.size // K
    # Channel-major flat layout: channel k occupies a contiguous row range so
    # the shared log-sigma stream stays at 1/K size in HBM (no broadcast_to).
    xc = jnp.moveaxis(x_sel, -1, 0).reshape(K, M)
    tc = jnp.moveaxis(t_sel, -1, 0).reshape(K, M)
    sc = s_sel.reshape(1, M)

    rows = pl.cdiv(M, _LANE)
    block_rows = max(8, int(block_rows))
    n_rb = pl.cdiv(rows, block_rows)
    blk_r = _round_up(pl.cdiv(rows, n_rb), 8)      # balanced blocks, tiny pad
    rows_pad = n_rb * blk_r
    pad = rows_pad * _LANE - M

    # These pads fuse with the static channel slice above into one producer
    # fusion (no standalone full-array pad copy).  t-pad = -1 so the tail is
    # masked inside the kernel by the t >= 0 test.
    xc = jnp.pad(xc, ((0, 0), (0, pad)))
    tc = jnp.pad(tc, ((0, 0), (0, pad)), constant_values=-1.0)
    sc = jnp.pad(sc, ((0, 0), (0, pad)))

    if stream_dtype is not None:                   # e.g. bf16 streams on v5e
        xc = xc.astype(stream_dtype)
        tc = tc.astype(stream_dtype)
        sc = sc.astype(stream_dtype)

    x3 = xc.reshape(K, rows_pad, _LANE)
    t3 = tc.reshape(K, rows_pad, _LANE)
    s3 = sc.reshape(1, rows_pad, _LANE)

    itemsize = jnp.dtype(x3.dtype).itemsize
    block_bytes = blk_r * _LANE * itemsize
    vmem_limit = int(min(max(3 * 2 * block_bytes + (8 << 20), 32 << 20),
                         96 << 20))

    kernel = functools.partial(
        _bce_kernel,
        focal_alpha=focal_alpha, focal_gamma=focal_gamma,
        soft_clamp_value=soft_clamp_value, background_clamp=background_clamp)

    xt_spec = pl.BlockSpec((None, blk_r, _LANE), lambda rb, k: (k, rb, 0))
    s_spec = pl.BlockSpec((None, blk_r, _LANE), lambda rb, k: (0, rb, 0))
    out_spec = pl.BlockSpec((None, None, 8, _LANE),
                            lambda rb, k: (rb, k, 0, 0))

    sums, cnts = pl.pallas_call(
        kernel,
        out_shape=(jax.ShapeDtypeStruct((n_rb, K, 8, _LANE), jnp.float32),
                   jax.ShapeDtypeStruct((n_rb, K, 8, _LANE), jnp.int32)),
        grid=(n_rb, K),
        in_specs=[xt_spec, xt_spec, s_spec],
        out_specs=(out_spec, out_spec),
        compiler_params=pltpu.CompilerParams(
            dimension_semantics=("parallel", "arbitrary"),
            vmem_limit_bytes=vmem_limit),
        interpret=interpret,
    )(x3, t3, s3)

    return jnp.sum(sums), jnp.sum(cnts)


def bce_loss(x_all, t_all, xi, ti, *, focal_alpha=0.5, focal_gamma=1.0,
             soft_clamp_value=5.0, background_clamp=-15.0, weights=None,
             block_rows=8192, stream_dtype=None, interpret=False):
    """openpifpaf Bce forward.

    Returns (loss_sum, valid_count): the sum of the masked per-element losses
    (== reference `l.sum()`) and the number of valid (t >= 0) elements.
    The variable-length per-element vector of the PyTorch module is a
    dynamic-shape boolean gather and is not materialized on device.
    """
    if weights is not None:
        # TODO(synk): optional per-channel `weights` (None by default in Bce)
        # is not implemented; fold it into `l` before the in-kernel reduce.
        raise NotImplementedError("per-channel weights are not supported")
    return _bce_loss_jit(
        x_all, t_all,
        xi=tuple(int(i) for i in xi), ti=tuple(int(i) for i in ti),
        focal_alpha=float(focal_alpha), focal_gamma=float(focal_gamma),
        soft_clamp_value=float(soft_clamp_value),
        background_clamp=float(background_clamp),
        block_rows=int(block_rows), stream_dtype=stream_dtype,
        interpret=bool(interpret))


def bce_reference(x_all, t_all, xi, ti, *, focal_alpha=0.5, focal_gamma=1.0,
                  soft_clamp_value=5.0, background_clamp=-15.0):
    """Pure-JAX dense reference (same math as the PyTorch module)."""
    x = _select_channels(x_all, xi).astype(jnp.float32)
    t = _select_channels(t_all, ti).astype(jnp.float32)
    s = jnp.broadcast_to(x_all[..., 0:1], x.shape).astype(jnp.float32)
    l, mask = _bce_elementwise(
        x, t, s, focal_alpha=focal_alpha, focal_gamma=focal_gamma,
        soft_clamp_value=soft_clamp_value, background_clamp=background_clamp)
    return jnp.sum(l), jnp.sum(mask.astype(jnp.int32))


if __name__ == "__main__":
    key = jax.random.PRNGKey(0)
    k1, k2, k3, k4 = jax.random.split(key, 4)

    def check(x_all, t_all, xi, ti, **kw):
        loss_sum, count = bce_loss(x_all, t_all, xi, ti, **kw)
        loss_sum = float(jax.block_until_ready(loss_sum))
        count = int(jax.block_until_ready(count))
        ref_sum, ref_cnt = bce_reference(x_all, t_all, xi, ti)
        ref_sum = float(jax.block_until_ready(ref_sum))
        ref_cnt = int(jax.block_until_ready(ref_cnt))
        assert count == ref_cnt, (count, ref_cnt)
        assert abs(loss_sum - ref_sum) <= 1e-3 * max(1.0, abs(ref_sum)), (
            loss_sum, ref_sum)

    # Case 1: single contiguous channel (typical Bce usage), small block_rows
    # so the tiny test shape still exercises the multi-block parallel grid.
    B, C, H, W, F = 2, 4, 32, 32, 5
    x_all = 4.0 * jax.random.normal(k1, (B, C, H, W, F), jnp.float32)
    t_all = jax.random.uniform(k2, (B, C, H, W, F), jnp.float32, -1.0, 1.0)
    check(x_all, t_all, [1], [1], block_rows=16)

    # Case 2: two non-contiguous channels + ragged flat length (exercises the
    # fused tail pad, the shared 1/K-size log-sigma stream and default block).
    B2, C2, H2, W2, F2 = 2, 3, 17, 19, 5
    x2 = 4.0 * jax.random.normal(k3, (B2, C2, H2, W2, F2), jnp.float32)
    t2 = jax.random.uniform(k4, (B2, C2, H2, W2, F2), jnp.float32, -1.0, 1.0)
    check(x2, t2, [1, 3], [1, 3])

    print("KERNEL_OK")
</pallas_src>

<mosaic_0001>
module attributes {stable_mosaic.version = 11 : i64} {
  func.func @_bce_kernel(%arg0: i32, %arg1: i32, %arg2: memref<1x16x128xf32, #tpu.memory_space<vmem>>, %arg3: memref<1x16x128xf32, #tpu.memory_space<vmem>>, %arg4: memref<1x16x128xf32, #tpu.memory_space<vmem>>, %arg5: memref<1x1x8x128xf32, #tpu.memory_space<vmem>>, %arg6: memref<1x1x8x128xi32, #tpu.memory_space<vmem>>) attributes {dimension_semantics = [#tpu.dimension_semantics<parallel>, #tpu.dimension_semantics<arbitrary>], iteration_bounds = array<i64: 4, 1>, scalar_prefetch = 0 : i64, scratch_operands = 0 : i64, tpu.core_type = #tpu.core_type<tc>, window_params = [{transform_indices = @transform_0, window_bounds = array<i64: 1, 16, 128>}, {transform_indices = @transform_1, window_bounds = array<i64: 1, 16, 128>}, {transform_indices = @transform_2, window_bounds = array<i64: 1, 16, 128>}, {transform_indices = @transform_3, window_bounds = array<i64: 1, 1, 8, 128>}, {transform_indices = @transform_4, window_bounds = array<i64: 1, 1, 8, 128>}]} {
    %c0 = arith.constant 0 : index
    %c0_0 = arith.constant 0 : index
    %c0_1 = arith.constant 0 : index
    %0 = vector.load %arg2[%c0, %c0_0, %c0_1] : memref<1x16x128xf32, #tpu.memory_space<vmem>>, vector<1x16x128xf32>
    %1 = vector.shape_cast %0 : vector<1x16x128xf32> to vector<16x128xf32>
    %c0_2 = arith.constant 0 : index
    %c0_3 = arith.constant 0 : index
    %c0_4 = arith.constant 0 : index
    %2 = vector.load %arg3[%c0_2, %c0_3, %c0_4] : memref<1x16x128xf32, #tpu.memory_space<vmem>>, vector<1x16x128xf32>
    %3 = vector.shape_cast %2 : vector<1x16x128xf32> to vector<16x128xf32>
    %c0_5 = arith.constant 0 : index
    %c0_6 = arith.constant 0 : index
    %c0_7 = arith.constant 0 : index
    %4 = vector.load %arg4[%c0_5, %c0_6, %c0_7] : memref<1x16x128xf32, #tpu.memory_space<vmem>>, vector<1x16x128xf32>
    %5 = vector.shape_cast %4 : vector<1x16x128xf32> to vector<16x128xf32>
    %cst = arith.constant 0.000000e+00 : f32
    %6 = vector.broadcast %cst : f32 to vector<16x128xf32>
    %7 = arith.cmpf ogt, %3, %6 : vector<16x128xf32>
    %cst_8 = arith.constant 1.000000e+00 : f32
    %cst_9 = arith.constant -1.000000e+00 : f32
    %8 = vector.broadcast %cst_8 : f32 to vector<16x128xf32>
    %9 = vector.broadcast %cst_9 : f32 to vector<16x128xf32>
    %10 = arith.select %7, %8, %9 : vector<16x128xi1>, vector<16x128xf32>
    %11 = arith.mulf %10, %1 : vector<16x128xf32>
    %12 = math.absf %11 : vector<16x128xf32>
    %cst_10 = arith.constant 0.000000e+00 : f32
    %13 = vector.broadcast %cst_10 : f32 to vector<16x128xf32>
    %14 = arith.subf %13, %12 : vector<16x128xf32>
    %15 = math.exp %14 : vector<16x128xf32>
    %cst_11 = arith.constant 1.000000e+00 : f32
    %16 = vector.broadcast %cst_11 : f32 to vector<16x128xf32>
    %17 = arith.addf %16, %15 : vector<16x128xf32>
    %18 = math.log %17 : vector<16x128xf32>
    %cst_12 = arith.constant 0.000000e+00 : f32
    %19 = vector.broadcast %cst_12 : f32 to vector<16x128xf32>
    %20 = arith.subf %19, %11 : vector<16x128xf32>
    %cst_13 = arith.constant 0.000000e+00 : f32
    %21 = vector.broadcast %cst_13 : f32 to vector<16x128xf32>
    %22 = arith.maximumf %20, %21 : vector<16x128xf32>
    %23 = arith.addf %22, %18 : vector<16x128xf32>
    %cst_14 = arith.constant 0.000000e+00 : f32
    %24 = vector.broadcast %cst_14 : f32 to vector<16x128xf32>
    %25 = arith.maximumf %11, %24 : vector<16x128xf32>
    %26 = arith.addf %25, %18 : vector<16x128xf32>
    %cst_15 = arith.constant 0.000000e+00 : f32
    %27 = vector.broadcast %cst_15 : f32 to vector<16x128xf32>
    %28 = arith.subf %27, %26 : vector<16x128xf32>
    %29 = math.exp %28 : vector<16x128xf32>
    %cst_16 = arith.constant 1.000000e+00 : f32
    %30 = vector.broadcast %cst_16 : f32 to vector<16x128xf32>
    %31 = arith.subf %30, %29 : vector<16x128xf32>
    %32 = arith.mulf %31, %23 : vector<16x128xf32>
    %33 = arith.addf %29, %32 : vector<16x128xf32>
    %cst_17 = arith.constant 5.000000e-01 : f32
    %34 = vector.broadcast %cst_17 : f32 to vector<16x128xf32>
    %35 = arith.mulf %34, %33 : vector<16x128xf32>
    %36 = arith.mulf %10, %29 : vector<16x128xf32>
    %37 = arith.mulf %36, %35 : vector<16x128xf32>
    %38 = arith.addf %1, %37 : vector<16x128xf32>
    %39 = arith.subf %1, %38 : vector<16x128xf32>
    %40 = math.absf %39 : vector<16x128xf32>
    %cst_18 = arith.constant 1.000000e+00 : f32
    %41 = vector.broadcast %cst_18 : f32 to vector<16x128xf32>
    %42 = arith.cmpf olt, %40, %41 : vector<16x128xf32>
    %cst_19 = arith.constant 5.000000e-01 : f32
    %43 = vector.broadcast %cst_19 : f32 to vector<16x128xf32>
    %44 = arith.mulf %43, %39 : vector<16x128xf32>
    %45 = arith.mulf %44, %39 : vector<16x128xf32>
    %cst_20 = arith.constant 5.000000e-01 : f32
    %46 = vector.broadcast %cst_20 : f32 to vector<16x128xf32>
    %47 = arith.subf %40, %46 : vector<16x128xf32>
    %48 = arith.select %42, %45, %47 : vector<16x128xi1>, vector<16x128xf32>
    %cst_21 = arith.constant -1.500000e+01 : f32
    %49 = vector.broadcast %cst_21 : f32 to vector<16x128xf32>
    %50 = arith.cmpf olt, %1, %49 : vector<16x128xf32>
    %cst_22 = arith.constant -1.000000e+00 : f32
    %51 = vector.broadcast %cst_22 : f32 to vector<16x128xf32>
    %52 = arith.cmpf oeq, %10, %51 : vector<16x128xf32>
    %53 = arith.andi %50, %52 : vector<16x128xi1>
    %cst_23 = arith.constant 0.000000e+00 : f32
    %54 = vector.broadcast %cst_23 : f32 to vector<16x128xf32>
    %55 = arith.select %53, %54, %48 : vector<16x128xi1>, vector<16x128xf32>
    %cst_24 = arith.constant 5.000000e+00 : f32
    %56 = vector.broadcast %cst_24 : f32 to vector<16x128xf32>
    %57 = arith.cmpf ogt, %55, %56 : vector<16x128xf32>
    %cst_25 = arith.constant -4.000000e+00 : f32
    %58 = vector.broadcast %cst_25 : f32 to vector<16x128xf32>
    %59 = arith.addf %58, %55 : vector<16x128xf32>
    %cst_26 = arith.constant 9.99999996E-13 : f32
    %60 = vector.broadcast %cst_26 : f32 to vector<16x128xf32>
    %61 = arith.maximumf %59, %60 : vector<16x128xf32>
    %62 = math.log %61 : vector<16x128xf32>
    %cst_27 = arith.constant 5.000000e+00 : f32
    %63 = vector.broadcast %cst_27 : f32 to vector<16x128xf32>
    %64 = arith.addf %63, %62 : vector<16x128xf32>
    %65 = arith.select %57, %64, %55 : vector<16x128xi1>, vector<16x128xf32>
    %cst_28 = arith.constant 0.333333343 : f32
    %66 = vector.broadcast %cst_28 : f32 to vector<16x128xf32>
    %67 = arith.mulf %5, %66 : vector<16x128xf32>
    %68 = math.tanh %67 : vector<16x128xf32>
    %cst_29 = arith.constant 3.000000e+00 : f32
    %69 = vector.broadcast %cst_29 : f32 to vector<16x128xf32>
    %70 = arith.mulf %69, %68 : vector<16x128xf32>
    %cst_30 = arith.constant 5.000000e-01 : f32
    %71 = vector.broadcast %cst_30 : f32 to vector<16x128xf32>
    %72 = arith.mulf %71, %65 : vector<16x128xf32>
    %cst_31 = arith.constant 0.000000e+00 : f32
    %73 = vector.broadcast %cst_31 : f32 to vector<16x128xf32>
    %74 = arith.subf %73, %70 : vector<16x128xf32>
    %75 = math.exp %74 : vector<16x128xf32>
    %76 = arith.mulf %72, %75 : vector<16x128xf32>
    %cst_32 = arith.constant 5.000000e-01 : f32
    %77 = vector.broadcast %cst_32 : f32 to vector<16x128xf32>
    %78 = arith.mulf %77, %70 : vector<16x128xf32>
    %79 = arith.addf %76, %78 : vector<16x128xf32>
    %cst_33 = arith.constant 0.000000e+00 : f32
    %80 = vector.broadcast %cst_33 : f32 to vector<16x128xf32>
    %81 = arith.cmpf ogt, %3, %80 : vector<16x128xf32>
    %82 = arith.select %81, %79, %65 : vector<16x128xi1>, vector<16x128xf32>
    %cst_34 = arith.constant 0.000000e+00 : f32
    %83 = vector.broadcast %cst_34 : f32 to vector<16x128xf32>
    %84 = arith.cmpf oge, %3, %83 : vector<16x128xf32>
    %cst_35 = arith.constant 0.000000e+00 : f32
    %85 = vector.broadcast %cst_35 : f32 to vector<16x128xf32>
    %86 = arith.select %84, %82, %85 : vector<16x128xi1>, vector<16x128xf32>
    %87 = vector.shape_cast %86 : vector<16x128xf32> to vector<2x8x128xf32>
    %cst_36 = arith.constant dense<0.000000e+00> : vector<8x128xf32>
    %88 = vector.multi_reduction <add>, %87, %cst_36 [0] : vector<2x8x128xf32> to vector<8x128xf32>
    %c0_37 = arith.constant 0 : index
    %c0_38 = arith.constant 0 : index
    %c0_39 = arith.constant 0 : index
    %c0_40 = arith.constant 0 : index
    %89 = vector.load %arg5[%c0_37, %c0_38, %c0_39, %c0_40] : memref<1x1x8x128xf32, #tpu.memory_space<vmem>>, vector<1x1x8x128xf32>
    %90 = vector.shape_cast %89 : vector<1x1x8x128xf32> to vector<8x128xf32>
    %91 = vector.shape_cast %88 : vector<8x128xf32> to vector<1x1x8x128xf32>
    tpu.vector_store %arg5[%c0_37, %c0_38, %c0_39, %c0_40], %91 {strides = array<i32>} : memref<1x1x8x128xf32, #tpu.memory_space<vmem>>, vector<1x1x8x128xf32>,
    %92 = arith.extui %84 : vector<16x128xi1> to vector<16x128xi32>
    %93 = vector.shape_cast %92 : vector<16x128xi32> to vector<2x8x128xi32>
    %cst_41 = arith.constant dense<0> : vector<8x128xi32>
    %94 = vector.multi_reduction <add>, %93, %cst_41 [0] : vector<2x8x128xi32> to vector<8x128xi32>
    %c0_42 = arith.constant 0 : index
    %c0_43 = arith.constant 0 : index
    %c0_44 = arith.constant 0 : index
    %c0_45 = arith.constant 0 : index
    %95 = vector.load %arg6[%c0_42, %c0_43, %c0_44, %c0_45] : memref<1x1x8x128xi32, #tpu.memory_space<vmem>>, vector<1x1x8x128xi32>
    %96 = vector.shape_cast %95 : vector<1x1x8x128xi32> to vector<8x128xi32>
    %97 = vector.shape_cast %94 : vector<8x128xi32> to vector<1x1x8x128xi32>
    tpu.vector_store %arg6[%c0_42, %c0_43, %c0_44, %c0_45], %97 {strides = array<i32>} : memref<1x1x8x128xi32, #tpu.memory_space<vmem>>, vector<1x1x8x128xi32>,
    return
  }
  func.func @transform_0(%arg0: i32, %arg1: i32) -> (i32, i32, i32) {
    %c0_i32 = arith.constant 0 : i32
    %c0_i32_0 = arith.constant 0 : i32
    return %arg1, %arg0, %c0_i32 : i32, i32, i32
  }
  func.func @transform_1(%arg0: i32, %arg1: i32) -> (i32, i32, i32) {
    %c0_i32 = arith.constant 0 : i32
    %c0_i32_0 = arith.constant 0 : i32
    return %arg1, %arg0, %c0_i32 : i32, i32, i32
  }
  func.func @transform_2(%arg0: i32, %arg1: i32) -> (i32, i32, i32) {
    %c0_i32 = arith.constant 0 : i32
    %c0_i32_0 = arith.constant 0 : i32
    %c0_i32_1 = arith.constant 0 : i32
    return %c0_i32, %arg0, %c0_i32_0 : i32, i32, i32
  }
  func.func @transform_3(%arg0: i32, %arg1: i32) -> (i32, i32, i32, i32) {
    %c0_i32 = arith.constant 0 : i32
    %c0_i32_0 = arith.constant 0 : i32
    %c0_i32_1 = arith.constant 0 : i32
    return %arg0, %arg1, %c0_i32, %c0_i32_0 : i32, i32, i32, i32
  }
  func.func @transform_4(%arg0: i32, %arg1: i32) -> (i32, i32, i32, i32) {
    %c0_i32 = arith.constant 0 : i32
    %c0_i32_0 = arith.constant 0 : i32
    %c0_i32_1 = arith.constant 0 : i32
    return %arg0, %arg1, %c0_i32, %c0_i32_0 : i32, i32, i32, i32
  }
}

</mosaic_0001>

<bundles_post_ra>
// kernel: _bce_loss_jit.1
= control target key start
LH: loop header
LB: loop body
LE: loop exit
PB: predicated region body
PF: predicated region fallthrough
CT: control target
= control target key end

     0   :  { %s699_s15 = smov 0   ;;  %s701_s16 = smov 0   ;;  %s799_s0 = inlined_call_operand.vmem [shape: f32[1,64,128], index: 0, kind: input, shape index: {}]   ;;  %s800_s1 = inlined_call_operand.vmem [shape: f32[1,64,128], index: 1, kind: input, shape index: {}]   ;;  %s801_s2 = inlined_call_operand.vmem [shape: f32[1,64,128], index: 2, kind: input, shape index: {}]   ;;  %s802_s3 = inlined_call_operand.vmem [shape: f32[4,1,8,128], index: 3, kind: output, shape index: {0}]   ;;  %s803_s4 = inlined_call_operand.vmem [shape: s32[4,1,8,128], index: 4, kind: output, shape index: {1}]  }
   0x1   :  { %s703_s17 = smov 0  }
   0x2 LB: > { %s27_s18 = sadd.s32 1, %s666_s16  ;;  %p585_p0 = scmp.ge.s32.totalorder %s670_s17, 1  ;;  %s670_s17 = sphi %s703_s17, %s15_s17   ;;  %s666_s16 = sphi %s701_s16, %s805_s16   ;;  %s662_s15 = sphi %s699_s15, %s804_s15  }
   0x3   : > { %p29_p1 = scmp.ge.s32.totalorder %s27_s18, 4  ;;  %p216_p2 = scmp.lt.s32.totalorder %s670_s17, 5 }
   0x5   : > { %s807_s18 = smov (%p29_p1, %s27_s18), 0  ;;  %p217_p3 = pnand %p585_p0, %p216_p2 }
   0x6   : > { %s586_s19 = sshll.u32 (!%p217_p3), %s662_s15, 1  ;;  %p295_p5 = scmp.lt.s32.totalorder (!%p217_p3), %s662_s15, 3  ;;  %v672_v4 = vmov (!%p217_p3), -1.0   ;;  %v673_v11 = vmov (!%p217_p3), 0  }
   0x7   : > { %220 = sbr.rel (%p217_p3) target bundleno = 124 (0x7c), region = 32  ;;  %p272_p4 = scmp.lt.s32.totalorder (!%p217_p3), %s586_s19, 7 }
   0xe   : > { %s809_s19 = smov (!%p272_p4, %s586_s19), 7  ;;  %s811_s15 = smov (!%p295_p5, %s662_s15), 3 }
   0xf   : > { %s717_s20 = sshll.u32 %s809_s19, 3  ;;  %s592_s27 = sshll.u32 %s811_s15, 3 }
  0x10   : > { %s277_s23 = scalar_lea.vmem %s799_s0, %s717_s20  ;;  %s287_s26 = scalar_lea.vmem %s800_s1, %s717_s20 }
  0x11   : > { %v729_v0 = vld [vmem:[%s277_s23] sm:$0xff]  ;;  %v733_v2 = vld [vmem:[%s277_s23 + $0x8] sm:$0xff]  ;;  %s308_s30 = scalar_lea.vmem %s803_s4, %s592_s27  ;;  %s293_s7 = scalar_lea.vmem %s801_s2, %s717_s20 }
  0x12   : > { %v731_v1 = vld [vmem:[%s287_s26] sm:$0xff]  ;;  %v735_v3 = vld [vmem:[%s287_s26 + $0x8] sm:$0xff]  ;;  %vm379_vm4 = vcmp.lt.f32.partialorder %v729_v0, -15.0  ;;  %vm380_vm6 = vcmp.lt.f32.partialorder %v733_v2, -15.0  ;;  %s301_s10 = scalar_lea.vmem %s802_s3, %s592_s27 }
  0x13   : > { %vm315_vm0 = vcmp.gt.f32.partialorder %v731_v1, 0.0  ;;  %vm316_vm1 = vcmp.gt.f32.partialorder %v735_v3, 0.0  ;;  %vm423_vm2 = vcmp.ge.f32.partialorder %v731_v1, 0.0  ;;  %vm424_vm3 = vcmp.ge.f32.partialorder %v735_v3, 0.0  ;;  %v313_v39 = vld [vmem:[%s293_s7] sm:$0xff]  ;;  %v314_v40 = vld [vmem:[%s293_s7 + $0x8] sm:$0xff] }
  0x14   : > { %v741_v5 = vsel %vm315_vm0, 1.0, %v672_v4  ;;  %v745_v6 = vsel %vm316_vm1, 1.0, %v672_v4  ;;  %v429_v12 = vsel %vm423_vm2, 1, %v673_v11  ;;  %v430_v14 = vsel %vm424_vm3, 1, %v673_v11 }
  0x15   : > { %v319_v7 = vmul.f32 %v741_v5, %v729_v0  ;;  %v320_v8 = vmul.f32 %v745_v6, %v733_v2  ;;  %v431_v16 = vadd.s32 %v430_v14, %v429_v12  ;;  %v401_v46 = vmul.f32 0.33333334, %v313_v39 }
  0x16   : > { %v402_v48 = vmul.f32 0.33333334, %v314_v40  ;;  %vm381_vm5 = vcmp.eq.f32.partialorder %v741_v5, -1.0  ;;  %vm382_vm7 = vcmp.eq.f32.partialorder %v745_v6, -1.0 }
  0x17   : > { %v321_v9 = vand.u32 2147483647, %v319_v7  ;;  %v322_v10 = vand.u32 2147483647, %v320_v8  ;;  %432 = vst [vmem:[%s308_s30] sm:$0xff] %v431_v16  ;;  %v341_v23 = vmax.f32 %v319_v7, 0.0  ;;  %v342_v25 = vmax.f32 %v320_v8, 0.0  ;;  %vm383_vm9 = vmand %vm379_vm4, %vm381_vm5 }
  0x18   : > { %v335_v35 = vsub.f32 0.0, %v319_v7  ;;  %v336_v36 = vsub.f32 0.0, %v320_v8  ;;  %vm384_vm11 = vmand %vm380_vm6, %vm382_vm7 }
  0x19   : > { %v323_v13 = vsub.f32 0.0, %v321_v9  ;;  %v324_v15 = vsub.f32 0.0, %v322_v10 }
  0x1a   : > { %v337_v37 = vmax.f32 %v335_v35, 0.0  ;;  %v338_v38 = vmax.f32 %v336_v36, 0.0 }
  0x1b   : > { %v325_v17 = vmul.f32 1.442695, %v323_v13  ;;  %v327_v18 = vmul.f32 1.442695, %v324_v15 }
  0x1d   : > { %624 = vpow2.f32 %v325_v17 }
  0x1e   : > { %626 = vpow2.f32 %v327_v18 }
  0x27   : > { %v625_v19 = vpop.eup %624 }
  0x28   : > { %v627_v20 = vpop.eup %626  ;;  %v329_v21 = vadd.f32 1.0, %v625_v19 }
  0x29   : > { %v330_v22 = vadd.f32 1.0, %v627_v20 }
  0x2a   : > { %628 = vlog2.f32 %v329_v21 }
  0x2b   : > { %630 = vlog2.f32 %v330_v22 }
  0x34   : > { %v629_v24 = vpop.eup %628 }
  0x35   : > { %v631_v26 = vpop.eup %630  ;;  %v332_v27 = vmul.f32 0.6931472, %v629_v24 }
  0x36   : > { %v334_v28 = vmul.f32 0.6931472, %v631_v26 }
  0x37   : > { %v343_v29 = vadd.f32 %v341_v23, %v332_v27  ;;  %v339_v41 = vadd.f32 %v337_v37, %v332_v27 }
  0x38   : > { %v344_v30 = vadd.f32 %v342_v25, %v334_v28  ;;  %v340_v43 = vadd.f32 %v338_v38, %v334_v28 }
  0x39   : > { %v345_v31 = vsub.f32 0.0, %v343_v29 }
  0x3a   : > { %v346_v32 = vsub.f32 0.0, %v344_v30 }
  0x3b   : > { %v347_v33 = vmul.f32 1.442695, %v345_v31 }
  0x3c   : > { %v349_v34 = vmul.f32 1.442695, %v346_v32 }
  0x3d   : > { %632 = vpow2.f32 %v347_v33 }
  0x3e   : > { %634 = vpow2.f32 %v349_v34 }
  0x3f   : > { %636 = vtanh.f32 %v401_v46 }
  0x40   : > { %638 = vtanh.f32 %v402_v48 }
  0x47   : > { %v633_v42 = vpop.eup %632 }
  0x48   : > { %v635_v44 = vpop.eup %634  ;;  %v351_v45 = vsub.f32 1.0, %v633_v42  ;;  %v359_v52 = vmul.f32 %v633_v42, %v741_v5 }
  0x49   : > { %v352_v47 = vsub.f32 1.0, %v635_v44  ;;  %v360_v54 = vmul.f32 %v635_v44, %v745_v6  ;;  %v637_v63 = vpop.eup %636 }
  0x4a   : > { %v353_v49 = vmul.f32 %v351_v45, %v339_v41  ;;  %v639_v8 = vpop.eup %638 }
  0x4b   : > { %v354_v50 = vmul.f32 %v352_v47, %v340_v43  ;;  %v406_v15 = vmul.f32 3.0, %v639_v8 }
  0x4c   : > { %v355_v51 = vadd.f32 %v633_v42, %v353_v49 }
  0x4d   : > { %v356_v53 = vadd.f32 %v635_v44, %v354_v50  ;;  %v410_v21 = vsub.f32 0.0, %v406_v15  ;;  %v418_v38 = vmul.f32 0.5, %v406_v15 }
  0x4e   : > { %v357_v55 = vmul.f32 0.5, %v355_v51 }
  0x4f   : > { %v358_v56 = vmul.f32 0.5, %v356_v53  ;;  %v413_v24 = vmul.f32 1.442695, %v410_v21 }
  0x50   : > { %v361_v57 = vmul.f32 %v359_v52, %v357_v55 }
  0x51   : > { %v362_v58 = vmul.f32 %v360_v54, %v358_v56 }
  0x52   : > { %v363_v59 = vadd.f32 %v361_v57, %v729_v0 }
  0x53   : > { %v364_v60 = vadd.f32 %v362_v58, %v733_v2 }
  0x54   : > { %v365_v61 = vsub.f32 %v729_v0, %v363_v59  ;;  %v405_v0 = vmul.f32 3.0, %v637_v63 }
  0x55   : > { %v366_v62 = vsub.f32 %v733_v2, %v364_v60 }
  0x56   : > { %v367_v4 = vand.u32 2147483647, %v365_v61  ;;  %v371_v7 = vmul.f32 0.5, %v365_v61  ;;  %v409_v6 = vsub.f32 0.0, %v405_v0  ;;  %v417_v36 = vmul.f32 0.5, %v405_v0 }
  0x57   : > { %v368_v9 = vand.u32 2147483647, %v366_v62  ;;  %v372_v10 = vmul.f32 0.5, %v366_v62 }
  0x58   : > { %vm369_vm8 = vcmp.lt.f32.partialorder %v367_v4, 1.0  ;;  %v373_v11 = vmul.f32 %v371_v7, %v365_v61  ;;  %v594_v12 = vadd.f32 -0.5, %v367_v4  ;;  %v411_v23 = vmul.f32 1.442695, %v409_v6 }
  0x59   : > { %vm370_vm10 = vcmp.lt.f32.partialorder %v368_v9, 1.0  ;;  %v374_v13 = vmul.f32 %v372_v10, %v366_v62  ;;  %v595_v14 = vadd.f32 -0.5, %v368_v9 }
  0x5a   : > { %v377_v5 = vsel %vm369_vm8, %v373_v11, %v594_v12 }
  0x5b   : > { %v378_v16 = vsel %vm370_vm10, %v374_v13, %v595_v14  ;;  %v385_v17 = vsel %vm383_vm9, 0.0, %v377_v5 }
  0x5c   : > { %v386_v18 = vsel %vm384_vm11, 0.0, %v378_v16  ;;  %v389_v2 = vadd.f32 -4.0, %v385_v17  ;;  %vm387_vm12 = vcmp.gt.f32.partialorder %v385_v17, 5.0 }
  0x5d   : > { %v390_v19 = vadd.f32 -4.0, %v386_v18  ;;  %vm388_vm13 = vcmp.gt.f32.partialorder %v386_v18, 5.0 }
  0x5e   : > { %v391_v20 = vmax.f32 %v389_v2, 1e-12 }
  0x5f   : > { %v392_v22 = vmax.f32 %v390_v19, 1e-12 }
  0x60   : > { %640 = vlog2.f32 %v391_v20 }
  0x61   : > { %642 = vlog2.f32 %v392_v22 }
  0x62   : > { %644 = vpow2.f32 %v411_v23 }
  0x63   : > { %646 = vpow2.f32 %v413_v24 }
  0x6a   : > { %v641_v25 = vpop.eup %640 }
  0x6b   : > { %v643_v26 = vpop.eup %642  ;;  %v394_v27 = vmul.f32 0.6931472, %v641_v25 }
  0x6c   : > { %v396_v28 = vmul.f32 0.6931472, %v643_v26  ;;  %v645_v31 = vpop.eup %644 }
  0x6d   : > { %v397_v29 = vadd.f32 5.0, %v394_v27  ;;  %v647_v33 = vpop.eup %646 }
  0x6e   : > { %v398_v30 = vadd.f32 5.0, %v396_v28 }
  0x6f   : > { %v399_v32 = vsel %vm387_vm12, %v397_v29, %v385_v17 }
  0x70   : > { %v400_v34 = vsel %vm388_vm13, %v398_v30, %v386_v18  ;;  %v407_v35 = vmul.f32 0.5, %v399_v32 }
  0x71   : > { %v408_v37 = vmul.f32 0.5, %v400_v34 }
  0x72   : > { %v415_v39 = vmul.f32 %v645_v31, %v407_v35 }
  0x73   : > { %v416_v40 = vmul.f32 %v647_v33, %v408_v37 }
  0x74   : > { %v419_v41 = vadd.f32 %v417_v36, %v415_v39 }
  0x75   : > { %v420_v42 = vadd.f32 %v418_v38, %v416_v40 }
  0x76   : > { %v421_v43 = vsel %vm315_vm0, %v419_v41, %v399_v32 }
  0x77   : > { %v422_v44 = vsel %vm316_vm1, %v420_v42, %v400_v34  ;;  %v425_v45 = vsel %vm423_vm2, %v421_v43, 0.0 }
  0x78   : > { %v426_v46 = vsel %vm424_vm3, %v422_v44, 0.0 }
  0x79   : > { %v427_v47 = vadd.f32 %v426_v46, %v425_v45 }
  0x7b   : > { %428 = vst [vmem:[%s301_s10] sm:$0xff] %v427_v47 }
  0x7c PF: > { %s15_s17 = sadd.s32 1, %s670_s17   ;;  %s804_s15 = smov %s666_s16 }
  0x7d   : > { %p12_p6 = scmp.ge.s32.totalorder %s15_s17, 6   ;;  %s805_s16 = smov %s807_s18 }
  0x7f   :  { %14 = sbr.rel (!%p12_p6) target bundleno = 2 (0x2), region = 80 }

</bundles_post_ra>
